<compile_context>
chip_gen: v7x
topology: tpu7x:2x2x1
jax: 0.10.0
libtpu: 0.0.40
codegen_flags: <defaults>
</compile_context>

<pallas_src>
import jax
import jax.numpy as jnp
from jax.experimental import pallas as pl
from jax.experimental.pallas import tpu as pltpu


# Metric-style arg lists are tiny; chunk only as a safety valve on the number
# of DMA semaphores allocated per kernel.
_MAX_DMAS_PER_CALL = 32


# --------------------------------- kernel ----------------------------------
def _dma_copy_kernel(*refs):
    """Direct HBM->HBM identity copies.

    refs = (in_0 .. in_{n-1}, out_0 .. out_{n-1}, sem_array)
    All refs live in pl.ANY (HBM); each pair is copied by one DMA.  All DMAs
    are issued first, then waited on, so transfers overlap on the DMA engine.
    """
    n = (len(refs) - 1) // 2
    sems = refs[-1]
    copies = [
        pltpu.make_async_copy(refs[i], refs[n + i], sems.at[i])
        for i in range(n)
    ]
    for cp in copies:      # issue every descriptor ...
        cp.start()
    for cp in copies:      # ... then block on completion.
        cp.wait()


def _device_copy(arrs):
    """Copy every array in `arrs` HBM->HBM with one pallas_call."""
    n = len(arrs)
    any_spec = pl.BlockSpec(memory_space=pl.ANY)
    outs = pl.pallas_call(
        _dma_copy_kernel,
        out_shape=tuple(jax.ShapeDtypeStruct(a.shape, a.dtype) for a in arrs),
        in_specs=[any_spec] * n,
        out_specs=tuple(any_spec for _ in range(n)),
        scratch_shapes=[pltpu.SemaphoreType.DMA((n,))],
    )(*arrs)
    return list(outs)


# ------------------------------ module glue --------------------------------
def metric_forward(*args, make_imageBatch: bool = False, donate: bool = False):
    """JAX/Pallas equivalent of Metric.forward.

    - converts each arg to a jnp array; non-array inputs become float32,
      matching torch.Tensor(...)'s default dtype (existing arrays keep theirs),
    - if make_imageBatch and the arg is 3-D, adds a leading batch dim,
    - "moves to device" via a single pallas_call of HBM->HBM DMA copies
      (or skips the copy entirely when donate=True).
    """
    converted = []
    for a in args:
        a_new = a if isinstance(a, jnp.ndarray) else jnp.asarray(a, dtype=jnp.float32)
        if make_imageBatch and a_new.ndim == 3:
            a_new = a_new[None, ...]
        converted.append(a_new)

    if donate:
        # .to(device) is a no-op once the data is resident; elide the copy.
        return converted

    results = [None] * len(converted)
    idxs, arrs = [], []
    for i, a in enumerate(converted):
        if a.size == 0 or a.ndim == 0:
            # Nothing to DMA (empty) / 0-d scalar already resident.
            results[i] = a
        else:
            idxs.append(i)
            arrs.append(a)

    # Single launch for all args (chunked only past _MAX_DMAS_PER_CALL).
    for start in range(0, len(arrs), _MAX_DMAS_PER_CALL):
        group_i = idxs[start:start + _MAX_DMAS_PER_CALL]
        group_a = arrs[start:start + _MAX_DMAS_PER_CALL]
        outs = _device_copy(group_a)
        for i, o in zip(group_i, outs):
            results[i] = o
    return results


# --------------------------------- demo ------------------------------------
if __name__ == "__main__":
    key = jax.random.PRNGKey(0)
    k1, k2, k3, k4 = jax.random.split(key, 4)

    # Small, module-typical inputs.
    x = jax.random.normal(k1, (2, 4, 16, 16), dtype=jnp.float32)   # NCHW batch
    y = jax.random.normal(k2, (4, 16, 16), dtype=jnp.float32)      # CHW image (unsqueezed)
    z = jax.random.normal(k3, (2, 8), dtype=jnp.float32)           # generic tensor
    w = jax.random.normal(k4, (4, 4, 32, 32), dtype=jnp.float32)   # larger batch
    lst = [[1.0, 2.0], [3.0, 4.0]]                                 # non-tensor input

    outs = metric_forward(x, y, z, w, lst, make_imageBatch=True)
    outs = [jax.block_until_ready(o) for o in outs]

    # Semantics checks: shapes / dtypes / values match the PyTorch module.
    assert outs[0].shape == (2, 4, 16, 16) and outs[0].dtype == jnp.float32
    assert outs[1].shape == (1, 4, 16, 16) and outs[1].dtype == jnp.float32
    assert outs[2].shape == (2, 8) and outs[2].dtype == jnp.float32
    assert outs[3].shape == (4, 4, 32, 32) and outs[3].dtype == jnp.float32
    assert outs[4].shape == (2, 2) and outs[4].dtype == jnp.float32
    assert jnp.array_equal(outs[0], x)
    assert jnp.array_equal(outs[1], y[None, ...])
    assert jnp.array_equal(outs[2], z)
    assert jnp.array_equal(outs[3], w)
    assert jnp.array_equal(outs[4], jnp.asarray(lst, dtype=jnp.float32))

    # Donation path (copy elided entirely).
    outs_d = metric_forward(x, y, make_imageBatch=True, donate=True)
    outs_d = [jax.block_until_ready(o) for o in outs_d]
    assert jnp.array_equal(outs_d[0], x)
    assert jnp.array_equal(outs_d[1], y[None, ...])

    print("KERNEL_OK")
</pallas_src>

<mosaic_0001>
module attributes {stable_mosaic.version = 11 : i64} {
  func.func @_dma_copy_kernel(%arg0: memref<2x4x16x16xf32, #tpu.memory_space<any>>, %arg1: memref<1x4x16x16xf32, #tpu.memory_space<any>>, %arg2: memref<2x8xf32, #tpu.memory_space<any>>, %arg3: memref<4x4x32x32xf32, #tpu.memory_space<any>>, %arg4: memref<2x2xf32, #tpu.memory_space<any>>, %arg5: memref<2x4x16x16xf32, #tpu.memory_space<any>>, %arg6: memref<1x4x16x16xf32, #tpu.memory_space<any>>, %arg7: memref<2x8xf32, #tpu.memory_space<any>>, %arg8: memref<4x4x32x32xf32, #tpu.memory_space<any>>, %arg9: memref<2x2xf32, #tpu.memory_space<any>>, %arg10: memref<5x!tpu.dma_semaphore, #tpu.memory_space<semaphore_mem>>) attributes {dimension_semantics = [], scalar_prefetch = 0 : i64, scratch_operands = 1 : i64, tpu.core_type = #tpu.core_type<tc>} {
    %c0_i32 = arith.constant 0 : i32
    %0 = tpu.memref_slice %arg10[%c0_i32] : memref<5x!tpu.dma_semaphore, #tpu.memory_space<semaphore_mem>> -> memref<1x!tpu.dma_semaphore, #tpu.memory_space<semaphore_mem>>
    %1 = tpu.memref_squeeze %0 : memref<1x!tpu.dma_semaphore, #tpu.memory_space<semaphore_mem>> -> memref<!tpu.dma_semaphore, #tpu.memory_space<semaphore_mem>>
    tpu.enqueue_dma source(%arg0 : memref<2x4x16x16xf32, #tpu.memory_space<any>>) target(%arg5 : memref<2x4x16x16xf32, #tpu.memory_space<any>>) target_semaphore(%1 : memref<!tpu.dma_semaphore, #tpu.memory_space<semaphore_mem>>)
    %c1_i32 = arith.constant 1 : i32
    %2 = tpu.memref_slice %arg10[%c1_i32] : memref<5x!tpu.dma_semaphore, #tpu.memory_space<semaphore_mem>> -> memref<1x!tpu.dma_semaphore, #tpu.memory_space<semaphore_mem>>
    %3 = tpu.memref_squeeze %2 : memref<1x!tpu.dma_semaphore, #tpu.memory_space<semaphore_mem>> -> memref<!tpu.dma_semaphore, #tpu.memory_space<semaphore_mem>>
    tpu.enqueue_dma source(%arg1 : memref<1x4x16x16xf32, #tpu.memory_space<any>>) target(%arg6 : memref<1x4x16x16xf32, #tpu.memory_space<any>>) target_semaphore(%3 : memref<!tpu.dma_semaphore, #tpu.memory_space<semaphore_mem>>)
    %c2_i32 = arith.constant 2 : i32
    %4 = tpu.memref_slice %arg10[%c2_i32] : memref<5x!tpu.dma_semaphore, #tpu.memory_space<semaphore_mem>> -> memref<1x!tpu.dma_semaphore, #tpu.memory_space<semaphore_mem>>
    %5 = tpu.memref_squeeze %4 : memref<1x!tpu.dma_semaphore, #tpu.memory_space<semaphore_mem>> -> memref<!tpu.dma_semaphore, #tpu.memory_space<semaphore_mem>>
    tpu.enqueue_dma source(%arg2 : memref<2x8xf32, #tpu.memory_space<any>>) target(%arg7 : memref<2x8xf32, #tpu.memory_space<any>>) target_semaphore(%5 : memref<!tpu.dma_semaphore, #tpu.memory_space<semaphore_mem>>)
    %c3_i32 = arith.constant 3 : i32
    %6 = tpu.memref_slice %arg10[%c3_i32] : memref<5x!tpu.dma_semaphore, #tpu.memory_space<semaphore_mem>> -> memref<1x!tpu.dma_semaphore, #tpu.memory_space<semaphore_mem>>
    %7 = tpu.memref_squeeze %6 : memref<1x!tpu.dma_semaphore, #tpu.memory_space<semaphore_mem>> -> memref<!tpu.dma_semaphore, #tpu.memory_space<semaphore_mem>>
    tpu.enqueue_dma source(%arg3 : memref<4x4x32x32xf32, #tpu.memory_space<any>>) target(%arg8 : memref<4x4x32x32xf32, #tpu.memory_space<any>>) target_semaphore(%7 : memref<!tpu.dma_semaphore, #tpu.memory_space<semaphore_mem>>)
    %c4_i32 = arith.constant 4 : i32
    %8 = tpu.memref_slice %arg10[%c4_i32] : memref<5x!tpu.dma_semaphore, #tpu.memory_space<semaphore_mem>> -> memref<1x!tpu.dma_semaphore, #tpu.memory_space<semaphore_mem>>
    %9 = tpu.memref_squeeze %8 : memref<1x!tpu.dma_semaphore, #tpu.memory_space<semaphore_mem>> -> memref<!tpu.dma_semaphore, #tpu.memory_space<semaphore_mem>>
    tpu.enqueue_dma source(%arg4 : memref<2x2xf32, #tpu.memory_space<any>>) target(%arg9 : memref<2x2xf32, #tpu.memory_space<any>>) target_semaphore(%9 : memref<!tpu.dma_semaphore, #tpu.memory_space<semaphore_mem>>)
    %c0_i32_0 = arith.constant 0 : i32
    %10 = tpu.memref_slice %arg10[%c0_i32_0] : memref<5x!tpu.dma_semaphore, #tpu.memory_space<semaphore_mem>> -> memref<1x!tpu.dma_semaphore, #tpu.memory_space<semaphore_mem>>
    %11 = tpu.memref_squeeze %10 : memref<1x!tpu.dma_semaphore, #tpu.memory_space<semaphore_mem>> -> memref<!tpu.dma_semaphore, #tpu.memory_space<semaphore_mem>>
    tpu.wait_dma2 semaphore(%11 : memref<!tpu.dma_semaphore, #tpu.memory_space<semaphore_mem>>) src(%arg0 : memref<2x4x16x16xf32, #tpu.memory_space<any>>) dst(%arg5 : memref<2x4x16x16xf32, #tpu.memory_space<any>>)
    %c1_i32_1 = arith.constant 1 : i32
    %12 = tpu.memref_slice %arg10[%c1_i32_1] : memref<5x!tpu.dma_semaphore, #tpu.memory_space<semaphore_mem>> -> memref<1x!tpu.dma_semaphore, #tpu.memory_space<semaphore_mem>>
    %13 = tpu.memref_squeeze %12 : memref<1x!tpu.dma_semaphore, #tpu.memory_space<semaphore_mem>> -> memref<!tpu.dma_semaphore, #tpu.memory_space<semaphore_mem>>
    tpu.wait_dma2 semaphore(%13 : memref<!tpu.dma_semaphore, #tpu.memory_space<semaphore_mem>>) src(%arg1 : memref<1x4x16x16xf32, #tpu.memory_space<any>>) dst(%arg6 : memref<1x4x16x16xf32, #tpu.memory_space<any>>)
    %c2_i32_2 = arith.constant 2 : i32
    %14 = tpu.memref_slice %arg10[%c2_i32_2] : memref<5x!tpu.dma_semaphore, #tpu.memory_space<semaphore_mem>> -> memref<1x!tpu.dma_semaphore, #tpu.memory_space<semaphore_mem>>
    %15 = tpu.memref_squeeze %14 : memref<1x!tpu.dma_semaphore, #tpu.memory_space<semaphore_mem>> -> memref<!tpu.dma_semaphore, #tpu.memory_space<semaphore_mem>>
    tpu.wait_dma2 semaphore(%15 : memref<!tpu.dma_semaphore, #tpu.memory_space<semaphore_mem>>) src(%arg2 : memref<2x8xf32, #tpu.memory_space<any>>) dst(%arg7 : memref<2x8xf32, #tpu.memory_space<any>>)
    %c3_i32_3 = arith.constant 3 : i32
    %16 = tpu.memref_slice %arg10[%c3_i32_3] : memref<5x!tpu.dma_semaphore, #tpu.memory_space<semaphore_mem>> -> memref<1x!tpu.dma_semaphore, #tpu.memory_space<semaphore_mem>>
    %17 = tpu.memref_squeeze %16 : memref<1x!tpu.dma_semaphore, #tpu.memory_space<semaphore_mem>> -> memref<!tpu.dma_semaphore, #tpu.memory_space<semaphore_mem>>
    tpu.wait_dma2 semaphore(%17 : memref<!tpu.dma_semaphore, #tpu.memory_space<semaphore_mem>>) src(%arg3 : memref<4x4x32x32xf32, #tpu.memory_space<any>>) dst(%arg8 : memref<4x4x32x32xf32, #tpu.memory_space<any>>)
    %c4_i32_4 = arith.constant 4 : i32
    %18 = tpu.memref_slice %arg10[%c4_i32_4] : memref<5x!tpu.dma_semaphore, #tpu.memory_space<semaphore_mem>> -> memref<1x!tpu.dma_semaphore, #tpu.memory_space<semaphore_mem>>
    %19 = tpu.memref_squeeze %18 : memref<1x!tpu.dma_semaphore, #tpu.memory_space<semaphore_mem>> -> memref<!tpu.dma_semaphore, #tpu.memory_space<semaphore_mem>>
    tpu.wait_dma2 semaphore(%19 : memref<!tpu.dma_semaphore, #tpu.memory_space<semaphore_mem>>) src(%arg4 : memref<2x2xf32, #tpu.memory_space<any>>) dst(%arg9 : memref<2x2xf32, #tpu.memory_space<any>>)
    return
  }
}

</mosaic_0001>

<bundles_post_ra>
// kernel: tpu_custom_call.1
= control target key start
LH: loop header
LB: loop body
LE: loop exit
PB: predicated region body
PF: predicated region fallthrough
CT: control target
= control target key end

     0   :  { %s200_s30 = smov [#allocation2]   ;;  %s201_s10 = smov [#allocation3]   ;;  %s308_s0 = inlined_call_operand.hbm [shape: f32[2,4,16,16], index: 0, kind: input, shape index: {}]   ;;  %s309_s5 = inlined_call_operand.hbm [shape: f32[2,4,16,16], index: 5, kind: output, shape index: {0}]   ;;  %s310_s2 = inlined_call_operand.vmem [shape: f32[2,8], index: 2, kind: input, shape index: {}]   ;;  %s311_s1 = inlined_call_operand.hbm [shape: f32[1,4,16,16], index: 1, kind: input, shape index: {}]   ;;  %s312_s6 = inlined_call_operand.hbm [shape: f32[1,4,16,16], index: 6, kind: output, shape index: {1}]   ;;  %s313_s7 = inlined_call_operand.hbm [shape: f32[2,8], index: 7, kind: output, shape index: {2}]   ;;  %s314_s4 = inlined_call_operand.vmem [shape: f32[2,2], index: 4, kind: input, shape index: {}]   ;;  %s315_s3 = inlined_call_operand.hbm [shape: f32[4,4,32,32], index: 3, kind: input, shape index: {}]   ;;  %s316_s8 = inlined_call_operand.hbm [shape: f32[4,4,32,32], index: 8, kind: output, shape index: {3}]   ;;  %s317_s9 = inlined_call_operand.hbm [shape: f32[2,2], index: 9, kind: output, shape index: {4}]  }
   0x1   :  { %s202_s11 = smov 0   ;;  %s50_s18 = sshll.u32 %s310_s2, 4  ;;  %s51_s18 = int_to_ptr.vmem [resolvable:$true] %s50_s18 }
   0x2   :  { %27 = dma.general %s308_s0, 2048, %s309_s5, %s200_s30, %s201_s10, [#allocation4], %s202_s11, 0  }
   0x3   :  { %s203_s19 = smov [#allocation2 + $0x1]   ;;  %s204_s20 = smov [#allocation5]  }
   0x4   :  { %41 = dma.general %s311_s1, 1024, %s312_s6, %s203_s19, %s204_s20, [#allocation6], %s202_s11, 0  }
   0x5   :  { %s146_s25 = scalar_lea.vmem %s51_s18, 32  ;;  %p151_p1 = scmp.lt.s32.totalorder %s51_s18, %s51_s18 }
   0x6   :  { %p147_p0 = scmp.ne.s32.totalorder %s51_s18, %s146_s25  ;;  %p152_p2 = scmp.lt.s32.totalorder %s146_s25, %s146_s25 }
   0x8   :  { %p153_p3 = por %p152_p2, %p151_p1 }
   0xa   :  { %p154_p4 = pnand %p153_p3, %p147_p0 }
   0xc   :  { %157 = shalt.err (!%p154_p4)  }
   0xd   :  { %s158_s5 = scalar_lea.hbm %s313_s7, 32 }
   0xe   :  { %p159_p5 = scmp.ne.s32.totalorder %s313_s7, %s158_s5  ;;  %p162_p6 = scmp.lt.u32.totalorder %s158_s5, %s313_s7 }
  0x10   :  { %p164_p7 = pnand %p162_p6, %p159_p5 }
  0x12   :  { %167 = shalt.err (!%p164_p7)  }
  0x13   :  { %53 = dma.vmem_to_hbm [thread:$0]  %s51_s18, 32, %s313_s7, [#allocation2 + $0x2] }
  0x14   :  { %s76_s12 = sshll.u32 %s314_s4, 4  ;;  %s205_s13 = smov [#allocation2 + $0x3]   ;;  %s77_s12 = int_to_ptr.vmem [resolvable:$true] %s76_s12 }
  0x15   :  { %s206_s14 = smov [#allocation11]   ;;  %s168_s20 = scalar_lea.vmem %s77_s12, 32 }
  0x16   :  { %67 = dma.general %s315_s3, 8192, %s316_s8, %s205_s13, %s206_s14, [#allocation12], %s202_s11, 0  }
  0x17   :  { %p169_p8 = scmp.ne.s32.totalorder %s77_s12, %s168_s20  ;;  %p173_p9 = scmp.lt.s32.totalorder %s77_s12, %s77_s12 }
  0x18   :  { %p174_p10 = scmp.lt.s32.totalorder %s168_s20, %s168_s20 }
  0x1a   :  { %p175_p11 = por %p174_p10, %p173_p9 }
  0x1c   :  { %p176_p12 = pnand %p175_p11, %p169_p8 }
  0x1e   :  { %179 = shalt.err (!%p176_p12)  }
  0x1f   :  { %s180_s18 = scalar_lea.hbm %s317_s9, 32 }
  0x20   :  { %p181_p13 = scmp.ne.s32.totalorder %s317_s9, %s180_s18  ;;  %p184_p0 = scmp.lt.u32.totalorder %s180_s18, %s317_s9 }
  0x22   :  { %p186_p1 = pnand %p184_p0, %p181_p13 }
  0x24   :  { %189 = shalt.err (!%p186_p1)  }
  0x25   :  { %79 = dma.vmem_to_hbm [thread:$0]  %s77_s12, 32, %s317_s9, [#allocation2 + $0x4] }
  0x26   :  { %190 = dma.done.wait [#allocation2], 2048 }
  0x27   :  { %191 = vsyncadd [#allocation2], 4294965248 }
  0x28   :  { %192 = dma.done.wait [#allocation2 + $0x1], 1024 }
  0x29   :  { %193 = vsyncadd [#allocation2 + $0x1], 4294966272 }
  0x2a   :  { %194 = dma.done.wait [#allocation2 + $0x2], 32 }
  0x2b   :  { %195 = vsyncadd [#allocation2 + $0x2], 4294967264 }
  0x2c   :  { %196 = dma.done.wait [#allocation2 + $0x3], 8192 }
  0x2d   :  { %197 = vsyncadd [#allocation2 + $0x3], 4294959104 }
  0x2e   :  { %198 = dma.done.wait [#allocation2 + $0x4], 32 }
  0x2f   :  { %199 = vsyncadd [#allocation2 + $0x4], 4294967264 }
  0x30   :  { %100 = vsyncmov [#allocation2] }
  0x33   :  { %s101_s11 = vpop.sfrf %100 }
  0x34   :  { %p134_p2 = scmp.ne.s32.totalorder %s101_s11, 0 }
  0x36   :  { %105 = shalt.err (%p134_p2)  }
  0x37   :  { %107 = vsyncmov [#allocation2 + $0x1] }
  0x3a   :  { %s108_s25 = vpop.sfrf %107 }
  0x3b   :  { %p135_p3 = scmp.ne.s32.totalorder %s108_s25, 0 }
  0x3d   :  { %112 = shalt.err (%p135_p3)  }
  0x3e   :  { %114 = vsyncmov [#allocation2 + $0x2] }
  0x41   :  { %s115_s9 = vpop.sfrf %114 }
  0x42   :  { %p136_p4 = scmp.ne.s32.totalorder %s115_s9, 0 }
  0x44   :  { %119 = shalt.err (%p136_p4)  }
  0x45   :  { %121 = vsyncmov [#allocation2 + $0x3] }
  0x48   :  { %s122_s0 = vpop.sfrf %121 }
  0x49   :  { %p137_p5 = scmp.ne.s32.totalorder %s122_s0, 0 }
  0x4b   :  { %126 = shalt.err (%p137_p5)  }
  0x4c   :  { %128 = vsyncmov [#allocation2 + $0x4] }
  0x4f   :  { %s129_s2 = vpop.sfrf %128 }
  0x50   :  { %p138_p6 = scmp.ne.s32.totalorder %s129_s2, 0 }
  0x52   :  { %133 = shalt.err (%p138_p6)  }

</bundles_post_ra>
